<compile_context>
chip_gen: v6e
topology: v6e:2x2x1
jax: 0.10.0
libtpu: 0.0.40
codegen_flags: <defaults>
</compile_context>

<pallas_src>
import functools

import jax
import jax.numpy as jnp
from jax.experimental import pallas as pl
from jax.experimental.pallas import tpu as pltpu


_EPS = 1e-5
_H = 128        # hidden width (layers 1 & 2)
_OUT = 100      # true output width (layer 3)
_OUT_PAD = 128  # lane-padded output width


def _lgenerator_kernel(x_ref, w1_ref, w23_ref, bn_ref, o_ref, *, inv_b):
    """Whole-batch fused forward, everything resident in VMEM.

    bn_ref rows: 0=g1, 1=be1, 2=g2, 3=be2, 4=g3(pad), 5=be3(pad)
    w23_ref columns: [:, 0:128] = w2, [:, 128:256] = w3 zero-padded to 128 out.
    Linear biases are intentionally absent: train-mode BN subtracts the batch
    mean right after each Linear, so per-feature biases cancel exactly.
    """

    def bn(h, gamma, beta, *, relu):
        # Train-mode BatchNorm1d with batch mean / biased batch var, eps=1e-5.
        # sum(h) and sum(h*h) are independent XLU reductions (one reduction deep
        # per layer instead of two); affine folded into one scale + shift and the
        # centered tensor is never materialized.
        s1 = jnp.sum(h, axis=0, keepdims=True)
        s2 = jnp.sum(h * h, axis=0, keepdims=True)
        mean = s1 * inv_b
        var = s2 * inv_b - mean * mean               # f32 throughout (cancellation-safe at BN scale)
        scale = gamma * jax.lax.rsqrt(var + _EPS)    # rsqrt -> EUP slot (free)
        shift = beta - mean * scale
        out = h * scale + shift
        return jnp.maximum(out, 0.0) if relu else out

    x = x_ref[...].astype(jnp.float32)               # (B, 2)

    # Layer 1: Linear(2,128) on the MXU (idle during BN); avoids XLU lane-broadcasts.
    h = jnp.dot(x, w1_ref[...], preferred_element_type=jnp.float32)
    h = bn(h, bn_ref[0:1, :], bn_ref[1:2, :], relu=True)

    # Layer 2: Linear(128,128) -> BN -> ReLU (MXU, f32 accumulate).
    h = jnp.dot(h, w23_ref[:, 0:_H], preferred_element_type=jnp.float32)
    h = bn(h, bn_ref[2:3, :], bn_ref[3:4, :], relu=True)

    # Layer 3: Linear(128, 100->padded 128) -> BN (no ReLU). Padded lanes stay exactly
    # zero because padded weights, gamma and beta are all zero-padded (so scale=shift=0).
    h = jnp.dot(h, w23_ref[:, _H:_H + _OUT_PAD], preferred_element_type=jnp.float32)
    h = bn(h, bn_ref[4:5, :], bn_ref[5:6, :], relu=False)

    o_ref[...] = h.astype(o_ref.dtype)               # lane-dense (B, 128) store


def _vmem_limit_bytes():
    """Generation-gated scoped-VMEM limit: ~half of physical, capped at 64 MiB."""
    try:
        cap = pltpu.get_tpu_info().vmem_capacity_bytes
    except Exception:
        cap = 64 * 1024 * 1024  # conservative fallback (assume v7x-sized VMEM)
    return min(cap // 2, 64 * 1024 * 1024)


def pack_params(params):
    """One-time packing of per-layer parameters into DMA-friendly slabs.

    Call once at init (outside the step) and reuse the result every forward call.
    """
    pad = _OUT_PAD - _OUT
    w3_p = jnp.pad(params["w3"], ((0, 0), (0, pad)))
    g3_p = jnp.pad(params["g3"], ((0, 0), (0, pad)))
    be3_p = jnp.pad(params["be3"], ((0, 0), (0, pad)))
    w23 = jnp.concatenate([params["w2"], w3_p], axis=1)                  # (128, 256)
    bn_slab = jnp.concatenate(
        [params["g1"], params["be1"], params["g2"], params["be2"], g3_p, be3_p],
        axis=0,
    )                                                                     # (6, 128)
    return dict(w1=params["w1"], w23=w23, bn=bn_slab)


def lgenerator_forward(x, packed):
    """x: [B, 2] float32 -> lane-padded [B, 128] float32 (train-mode BN forward).

    Columns [100:128] of the result are identically zero; the consumer slices
    (or ignores) them — keeping the output lane-padded avoids an extra
    non-lane-dense HBM copy per step.
    """
    B = x.shape[0]
    flops = 2 * B * (2 * _H + _H * _H + _H * _OUT_PAD)
    bytes_accessed = 4 * (
        B * 2 + 2 * _H + _H * 2 * _H + 6 * _H + B * _OUT_PAD
    )
    vmem = pl.BlockSpec(memory_space=pltpu.MemorySpace.VMEM)
    return pl.pallas_call(
        functools.partial(_lgenerator_kernel, inv_b=1.0 / B),
        out_shape=jax.ShapeDtypeStruct((B, _OUT_PAD), jnp.float32),
        in_specs=[vmem, vmem, vmem, vmem],
        out_specs=vmem,
        compiler_params=pltpu.CompilerParams(vmem_limit_bytes=_vmem_limit_bytes()),
        cost_estimate=pl.CostEstimate(
            flops=flops, transcendentals=3 * _H, bytes_accessed=bytes_accessed
        ),
    )(x, packed["w1"], packed["w23"], packed["bn"])


def init_params(key):
    """Deterministic synthetic parameters matching LGenerator(dim_z).m shapes."""
    ks = jax.random.split(key, 12)

    def lin(kw, kb, fan_in, fan_out):
        # Linear weights stored as [in, out] (transposed from torch's [out, in]).
        bound = 1.0 / jnp.sqrt(fan_in)
        w = jax.random.uniform(kw, (fan_in, fan_out), jnp.float32, -bound, bound)
        b = jax.random.uniform(kb, (1, fan_out), jnp.float32, -bound, bound)
        return w, b

    w1, b1 = lin(ks[0], ks[1], 2, 128)
    w2, b2 = lin(ks[2], ks[3], 128, 128)
    w3, b3 = lin(ks[4], ks[5], 128, 100)

    g1 = 1.0 + 0.1 * jax.random.normal(ks[6], (1, 128), jnp.float32)
    be1 = 0.1 * jax.random.normal(ks[7], (1, 128), jnp.float32)
    g2 = 1.0 + 0.1 * jax.random.normal(ks[8], (1, 128), jnp.float32)
    be2 = 0.1 * jax.random.normal(ks[9], (1, 128), jnp.float32)
    g3 = 1.0 + 0.1 * jax.random.normal(ks[10], (1, 100), jnp.float32)
    be3 = 0.1 * jax.random.normal(ks[11], (1, 100), jnp.float32)

    return dict(
        w1=w1, b1=b1, g1=g1, be1=be1,
        w2=w2, b2=b2, g2=g2, be2=be2,
        w3=w3, b3=b3, g3=g3, be3=be3,
    )


def _reference(x, p):
    """Pure-JAX reference of the PyTorch forward (train-mode BN, biases included)."""
    def bn(h, g, b):
        m = jnp.mean(h, axis=0, keepdims=True)
        v = jnp.mean((h - m) ** 2, axis=0, keepdims=True)
        return (h - m) / jnp.sqrt(v + _EPS) * g + b

    h = x @ p["w1"] + p["b1"]
    h = jnp.maximum(bn(h, p["g1"], p["be1"]), 0.0)
    h = h @ p["w2"] + p["b2"]
    h = jnp.maximum(bn(h, p["g2"], p["be2"]), 0.0)
    h = h @ p["w3"] + p["b3"]
    return bn(h, p["g3"], p["be3"])


if __name__ == "__main__":
    key = jax.random.PRNGKey(0)
    k_x, k_p = jax.random.split(key)

    B = 8  # small batch; train-mode BatchNorm reduces over this axis
    x = jax.random.normal(k_x, (B, 2), jnp.float32)
    params = init_params(k_p)

    # Pack once, outside the step (perf: no per-call pad/concat HLOs).
    packed = pack_params(params)
    packed = jax.tree_util.tree_map(jax.block_until_ready, packed)

    fwd = jax.jit(lgenerator_forward)
    out_padded = jax.block_until_ready(fwd(x, packed))   # (B, 128), lanes 100:128 zero

    ref = _reference(x, params)
    out = out_padded[:, :_OUT]                           # consumer-side slice (check only)

    assert out_padded.shape == (B, _OUT_PAD), out_padded.shape
    assert bool(jnp.all(out_padded[:, _OUT:] == 0.0)), "padded lanes must be exactly zero"
    assert jnp.allclose(out, ref, atol=1e-4, rtol=1e-4), float(
        jnp.max(jnp.abs(out - ref))
    )

    print("KERNEL_OK")
</pallas_src>

<mosaic_0001>
module attributes {stable_mosaic.version = 11 : i64} {
  func.func @_lgenerator_kernel(%arg0: memref<8x2xf32, #tpu.memory_space<vmem>>, %arg1: memref<2x128xf32, #tpu.memory_space<vmem>>, %arg2: memref<128x256xf32, #tpu.memory_space<vmem>>, %arg3: memref<6x128xf32, #tpu.memory_space<vmem>>, %arg4: memref<8x128xf32, #tpu.memory_space<vmem>>) attributes {dimension_semantics = [], scalar_prefetch = 0 : i64, scratch_operands = 0 : i64, tpu.core_type = #tpu.core_type<tc>} {
    %c0 = arith.constant 0 : index
    %c0_0 = arith.constant 0 : index
    %0 = vector.load %arg0[%c0, %c0_0] : memref<8x2xf32, #tpu.memory_space<vmem>>, vector<8x2xf32>
    %c0_1 = arith.constant 0 : index
    %c0_2 = arith.constant 0 : index
    %1 = vector.load %arg1[%c0_1, %c0_2] : memref<2x128xf32, #tpu.memory_space<vmem>>, vector<2x128xf32>
    %cst = arith.constant dense<0.000000e+00> : vector<8x128xf32>
    %2 = tpu.matmul %0, %1, %cst {dimension_numbers = #tpu.dot_dimension_numbers<[1], [0], [0], [1], [0, 0, 1, 1], [], []>} : vector<8x2xf32>, vector<2x128xf32>, vector<8x128xf32> -> vector<8x128xf32>
    %c0_3 = arith.constant 0 : index
    %c0_4 = arith.constant 0 : index
    %3 = vector.load %arg3[%c0_3, %c0_4] : memref<6x128xf32, #tpu.memory_space<vmem>>, vector<1x128xf32>
    %c1 = arith.constant 1 : index
    %c0_5 = arith.constant 0 : index
    %4 = vector.load %arg3[%c1, %c0_5] : memref<6x128xf32, #tpu.memory_space<vmem>>, vector<1x128xf32>
    %cst_6 = arith.constant dense<0.000000e+00> : vector<128xf32>
    %5 = vector.multi_reduction <add>, %2, %cst_6 [0] : vector<8x128xf32> to vector<128xf32>
    %6 = vector.shape_cast %5 : vector<128xf32> to vector<1x128xf32>
    %7 = arith.mulf %2, %2 : vector<8x128xf32>
    %cst_7 = arith.constant dense<0.000000e+00> : vector<128xf32>
    %8 = vector.multi_reduction <add>, %7, %cst_7 [0] : vector<8x128xf32> to vector<128xf32>
    %9 = vector.shape_cast %8 : vector<128xf32> to vector<1x128xf32>
    %cst_8 = arith.constant 1.250000e-01 : f32
    %10 = vector.broadcast %cst_8 : f32 to vector<1x128xf32>
    %11 = arith.mulf %6, %10 : vector<1x128xf32>
    %cst_9 = arith.constant 1.250000e-01 : f32
    %12 = vector.broadcast %cst_9 : f32 to vector<1x128xf32>
    %13 = arith.mulf %9, %12 : vector<1x128xf32>
    %14 = arith.mulf %11, %11 : vector<1x128xf32>
    %15 = arith.subf %13, %14 : vector<1x128xf32>
    %cst_10 = arith.constant 9.99999974E-6 : f32
    %16 = vector.broadcast %cst_10 : f32 to vector<1x128xf32>
    %17 = arith.addf %15, %16 : vector<1x128xf32>
    %18 = math.rsqrt %17 : vector<1x128xf32>
    %19 = arith.mulf %3, %18 : vector<1x128xf32>
    %20 = arith.mulf %11, %19 : vector<1x128xf32>
    %21 = arith.subf %4, %20 : vector<1x128xf32>
    %22 = vector.broadcast %19 : vector<1x128xf32> to vector<8x128xf32>
    %23 = arith.mulf %2, %22 : vector<8x128xf32>
    %24 = vector.broadcast %21 : vector<1x128xf32> to vector<8x128xf32>
    %25 = arith.addf %23, %24 : vector<8x128xf32>
    %cst_11 = arith.constant 0.000000e+00 : f32
    %26 = vector.broadcast %cst_11 : f32 to vector<8x128xf32>
    %27 = arith.maximumf %25, %26 : vector<8x128xf32>
    %c0_12 = arith.constant 0 : index
    %c0_13 = arith.constant 0 : index
    %28 = vector.load %arg2[%c0_12, %c0_13] : memref<128x256xf32, #tpu.memory_space<vmem>>, vector<128x128xf32>
    %cst_14 = arith.constant dense<0.000000e+00> : vector<8x128xf32>
    %29 = tpu.matmul %27, %28, %cst_14 {dimension_numbers = #tpu.dot_dimension_numbers<[1], [0], [0], [1], [0, 0, 1, 1], [], []>} : vector<8x128xf32>, vector<128x128xf32>, vector<8x128xf32> -> vector<8x128xf32>
    %c2 = arith.constant 2 : index
    %c0_15 = arith.constant 0 : index
    %30 = vector.load %arg3[%c2, %c0_15] : memref<6x128xf32, #tpu.memory_space<vmem>>, vector<1x128xf32>
    %c3 = arith.constant 3 : index
    %c0_16 = arith.constant 0 : index
    %31 = vector.load %arg3[%c3, %c0_16] : memref<6x128xf32, #tpu.memory_space<vmem>>, vector<1x128xf32>
    %cst_17 = arith.constant dense<0.000000e+00> : vector<128xf32>
    %32 = vector.multi_reduction <add>, %29, %cst_17 [0] : vector<8x128xf32> to vector<128xf32>
    %33 = vector.shape_cast %32 : vector<128xf32> to vector<1x128xf32>
    %34 = arith.mulf %29, %29 : vector<8x128xf32>
    %cst_18 = arith.constant dense<0.000000e+00> : vector<128xf32>
    %35 = vector.multi_reduction <add>, %34, %cst_18 [0] : vector<8x128xf32> to vector<128xf32>
    %36 = vector.shape_cast %35 : vector<128xf32> to vector<1x128xf32>
    %cst_19 = arith.constant 1.250000e-01 : f32
    %37 = vector.broadcast %cst_19 : f32 to vector<1x128xf32>
    %38 = arith.mulf %33, %37 : vector<1x128xf32>
    %cst_20 = arith.constant 1.250000e-01 : f32
    %39 = vector.broadcast %cst_20 : f32 to vector<1x128xf32>
    %40 = arith.mulf %36, %39 : vector<1x128xf32>
    %41 = arith.mulf %38, %38 : vector<1x128xf32>
    %42 = arith.subf %40, %41 : vector<1x128xf32>
    %cst_21 = arith.constant 9.99999974E-6 : f32
    %43 = vector.broadcast %cst_21 : f32 to vector<1x128xf32>
    %44 = arith.addf %42, %43 : vector<1x128xf32>
    %45 = math.rsqrt %44 : vector<1x128xf32>
    %46 = arith.mulf %30, %45 : vector<1x128xf32>
    %47 = arith.mulf %38, %46 : vector<1x128xf32>
    %48 = arith.subf %31, %47 : vector<1x128xf32>
    %49 = vector.broadcast %46 : vector<1x128xf32> to vector<8x128xf32>
    %50 = arith.mulf %29, %49 : vector<8x128xf32>
    %51 = vector.broadcast %48 : vector<1x128xf32> to vector<8x128xf32>
    %52 = arith.addf %50, %51 : vector<8x128xf32>
    %cst_22 = arith.constant 0.000000e+00 : f32
    %53 = vector.broadcast %cst_22 : f32 to vector<8x128xf32>
    %54 = arith.maximumf %52, %53 : vector<8x128xf32>
    %c0_23 = arith.constant 0 : index
    %c128 = arith.constant 128 : index
    %55 = vector.load %arg2[%c0_23, %c128] : memref<128x256xf32, #tpu.memory_space<vmem>>, vector<128x128xf32>
    %cst_24 = arith.constant dense<0.000000e+00> : vector<8x128xf32>
    %56 = tpu.matmul %54, %55, %cst_24 {dimension_numbers = #tpu.dot_dimension_numbers<[1], [0], [0], [1], [0, 0, 1, 1], [], []>} : vector<8x128xf32>, vector<128x128xf32>, vector<8x128xf32> -> vector<8x128xf32>
    %c4 = arith.constant 4 : index
    %c0_25 = arith.constant 0 : index
    %57 = vector.load %arg3[%c4, %c0_25] : memref<6x128xf32, #tpu.memory_space<vmem>>, vector<1x128xf32>
    %c5 = arith.constant 5 : index
    %c0_26 = arith.constant 0 : index
    %58 = vector.load %arg3[%c5, %c0_26] : memref<6x128xf32, #tpu.memory_space<vmem>>, vector<1x128xf32>
    %cst_27 = arith.constant dense<0.000000e+00> : vector<128xf32>
    %59 = vector.multi_reduction <add>, %56, %cst_27 [0] : vector<8x128xf32> to vector<128xf32>
    %60 = vector.shape_cast %59 : vector<128xf32> to vector<1x128xf32>
    %61 = arith.mulf %56, %56 : vector<8x128xf32>
    %cst_28 = arith.constant dense<0.000000e+00> : vector<128xf32>
    %62 = vector.multi_reduction <add>, %61, %cst_28 [0] : vector<8x128xf32> to vector<128xf32>
    %63 = vector.shape_cast %62 : vector<128xf32> to vector<1x128xf32>
    %cst_29 = arith.constant 1.250000e-01 : f32
    %64 = vector.broadcast %cst_29 : f32 to vector<1x128xf32>
    %65 = arith.mulf %60, %64 : vector<1x128xf32>
    %cst_30 = arith.constant 1.250000e-01 : f32
    %66 = vector.broadcast %cst_30 : f32 to vector<1x128xf32>
    %67 = arith.mulf %63, %66 : vector<1x128xf32>
    %68 = arith.mulf %65, %65 : vector<1x128xf32>
    %69 = arith.subf %67, %68 : vector<1x128xf32>
    %cst_31 = arith.constant 9.99999974E-6 : f32
    %70 = vector.broadcast %cst_31 : f32 to vector<1x128xf32>
    %71 = arith.addf %69, %70 : vector<1x128xf32>
    %72 = math.rsqrt %71 : vector<1x128xf32>
    %73 = arith.mulf %57, %72 : vector<1x128xf32>
    %74 = arith.mulf %65, %73 : vector<1x128xf32>
    %75 = arith.subf %58, %74 : vector<1x128xf32>
    %76 = vector.broadcast %73 : vector<1x128xf32> to vector<8x128xf32>
    %77 = arith.mulf %56, %76 : vector<8x128xf32>
    %78 = vector.broadcast %75 : vector<1x128xf32> to vector<8x128xf32>
    %79 = arith.addf %77, %78 : vector<8x128xf32>
    %c0_32 = arith.constant 0 : index
    %c0_33 = arith.constant 0 : index
    %80 = vector.load %arg4[%c0_32, %c0_33] : memref<8x128xf32, #tpu.memory_space<vmem>>, vector<8x128xf32>
    tpu.vector_store %arg4[%c0_32, %c0_33], %79 {strides = array<i32>} : memref<8x128xf32, #tpu.memory_space<vmem>>, vector<8x128xf32>,
    return
  }
}

</mosaic_0001>

<bundles_post_ra>
// kernel: lgenerator_forward.1
= control target key start
LH: loop header
LB: loop body
LE: loop exit
PB: predicated region body
PF: predicated region fallthrough
CT: control target
= control target key end

     0   :  { %9 = vsyncpa [#allocation3], 0  ;;  %s678_s0 = inlined_call_operand.vmem [shape: f32[8,2], index: 0, kind: input, shape index: {}]   ;;  %s679_s1 = inlined_call_operand.vmem [shape: f32[2,128], index: 1, kind: input, shape index: {}]   ;;  %s680_s2 = inlined_call_operand.hbm [shape: f32[128,256], index: 2, kind: input, shape index: {}]   ;;  %s681_s3 = inlined_call_operand.vmem [shape: f32[6,128], index: 3, kind: input, shape index: {}]   ;;  %s682_s4 = inlined_call_operand.hbm [shape: f32[8,128], index: 4, kind: output, shape index: {}]  }
   0x1   :  { %10 = vsyncpa [#allocation4], 0  ;;  %s573_s15 = smov [#allocation2]  }
   0x2   :  { %s20_s16 = sshll.u32 %s573_s15, 4  ;;  %s21_s16 = int_to_ptr.vmem [resolvable:$true] %s20_s16 }
   0x3   :  { %s537_s17 = scalar_lea.vmem %s21_s16, 4096  ;;  %p542_p1 = scmp.lt.s32.totalorder %s21_s16, %s21_s16 }
   0x4   :  { %p538_p0 = scmp.ne.s32.totalorder %s21_s16, %s537_s17  ;;  %p543_p2 = scmp.lt.s32.totalorder %s537_s17, %s537_s17 }
   0x6   :  { %p544_p3 = por %p543_p2, %p542_p1 }
   0x8   :  { %p545_p4 = pnand %p544_p3, %p538_p0 }
   0xa   :  { %548 = shalt.err (!%p545_p4)
}
   0xb   :  { %s574_s18 = smov 256   ;;  %s575_s19 = smov 16  }
   0xc   :  { %26 = dma.hbm_to_vmem [thread:$0]  %s680_s2, 4096, %s21_s16, [#allocation3], %s574_s18, %s574_s18, %s575_s19  }
   0xd   :  { %569 = dma.done.wait [#allocation3], 4096  }
   0xe   :  { %570 = vsyncadd [#allocation3], 4294963200  ;;  %v576_v0 = vmov 0.0   ;;  %vm577_vm0 = vmmov 0   ;;  %vm38_vm1 = vcmask 1041408   ;;  %vm34_vm2 = vcmask 15360  }
   0xf   :  { %442 = vmatprep.subr.mxu0 %v576_v0  ;;  %444 = vmatprep.mubr.msk.f32.mxu0 %vm577_vm0, %v576_v0  ;;  %v33_v1 = vld [vmem:[%s679_s1] sm:$0x3]  ;;  %v162_v3 = vld [vmem:[#allocation2 + $0xf0] sm:$0xff]  ;;  %v136_v39 = vlaneseq  ;;  %v283_v53 = vld [vmem:[#allocation2 + $0xf8] sm:$0xff]  ;;  %s578_s9 = smov [#allocation5]  }
  0x10   :  { %447 = vmatprep.subr.mxu1 %v576_v0  ;;  %479 = vmatprep.mubr.msk.f32.mxu1 %vm577_vm0, %v576_v0  ;;  %v32_v2 = vld [vmem:[%s678_s0] sm:$0xff]  ;;  %v160_v5 = vld [vmem:[#allocation2 + $0xd0] sm:$0xff]  ;;  %v282_v54 = vld [vmem:[#allocation2 + $0xe8] sm:$0xff]  ;;  %s395_s10 = sshll.u32 %s578_s9, 4  ;;  %s396_s10 = int_to_ptr.vmem [resolvable:$true] %s395_s10 }
  0x11   :  { %443 = vmatpush3.msk.msra.mxu0 %vm38_vm1, %v33_v1  ;;  %448 = vmatpush3.msra.mxu1 %v162_v3  ;;  %v161_v4 = vld [vmem:[#allocation2 + $0xe0] sm:$0xff]  ;;  %v158_v7 = vld [vmem:[#allocation2 + $0xb0] sm:$0xff]  ;;  %v137_v40 = vshrl.u32 %v136_v39, 7  ;;  %v281_v55 = vld [vmem:[#allocation2 + $0xd8] sm:$0xff]  ;;  %s549_s11 = scalar_lea.vmem %s396_s10, 128  ;;  %p554_p6 = scmp.lt.s32.totalorder %s396_s10, %s396_s10 }
  0x12   :  { %445 = vmatmul.mubr.msk.f32.vlgmr.msra.gmra.mxu0 %vm34_vm2, %v32_v2  ;;  %482 = vmatprep.subr.mxu0 %v576_v0  ;;  %v159_v6 = vld [vmem:[#allocation2 + $0xc0] sm:$0xff]  ;;  %v156_v9 = vld [vmem:[#allocation2 + $0x90] sm:$0xff]  ;;  %v280_v56 = vld [vmem:[#allocation2 + $0xc8] sm:$0xff]  ;;  %p550_p5 = scmp.ne.s32.totalorder %s396_s10, %s549_s11  ;;  %p555_p7 = scmp.lt.s32.totalorder %s549_s11, %s549_s11 }
  0x13   :  { %514 = vmatprep.mubr.msk.f32.mxu0 %vm577_vm0, %v576_v0  ;;  %449 = vmatprep.subr.mxu1 %v576_v0  ;;  %v157_v8 = vld [vmem:[#allocation2 + $0xa0] sm:$0xff]  ;;  %v154_v11 = vld [vmem:[#allocation2 + $0x70] sm:$0xff]  ;;  %v637_v42 = vsub.s32 0, %v137_v40  ;;  %v279_v57 = vld [vmem:[#allocation2 + $0xb8] sm:$0xff] }
  0x14   :  { %450 = vmatpush3.msra.mxu1 %v161_v4  ;;  %v155_v10 = vld [vmem:[#allocation2 + $0x80] sm:$0xff]  ;;  %v152_v13 = vld [vmem:[#allocation2 + $0x50] sm:$0xff]  ;;  %483 = vmatpush3.msra.mxu0 %v283_v53  ;;  %v278_v58 = vld [vmem:[#allocation2 + $0xa8] sm:$0xff]  ;;  %p556_p8 = por %p555_p7, %p554_p6 }
  0x15   :  { %451 = vmatprep.subr.mxu1 %v576_v0  ;;  %v153_v12 = vld [vmem:[#allocation2 + $0x60] sm:$0xff]  ;;  %v150_v15 = vld [vmem:[#allocation2 + $0x30] sm:$0xff]  ;;  %484 = vmatprep.subr.mxu0 %v576_v0  ;;  %v277_v59 = vld [vmem:[#allocation2 + $0x98] sm:$0xff] }
  0x16   :  { %452 = vmatpush3.msra.mxu1 %v160_v5  ;;  %v151_v14 = vld [vmem:[#allocation2 + $0x40] sm:$0xff]  ;;  %v148_v17 = vld [vmem:[#allocation2 + $0x10] sm:$0xff]  ;;  %485 = vmatpush3.msra.mxu0 %v282_v54  ;;  %v276_v60 = vld [vmem:[#allocation2 + $0x88] sm:$0xff]  ;;  %p557_p9 = pnand %p556_p8, %p550_p5 }
  0x17   :  { %453 = vmatprep.subr.mxu1 %v576_v0  ;;  %v149_v16 = vld [vmem:[#allocation2 + $0x20] sm:$0xff]  ;;  %486 = vmatprep.subr.mxu0 %v576_v0  ;;  %v275_v61 = vld [vmem:[#allocation2 + $0x78] sm:$0xff]  ;;  %v274_v62 = vld [vmem:[#allocation2 + $0x68] sm:$0xff] }
  0x18   :  { %454 = vmatpush3.msra.mxu1 %v159_v6  ;;  %v147_v18 = vld [vmem:[#allocation2] sm:$0xff]  ;;  %487 = vmatpush3.msra.mxu0 %v281_v55  ;;  %v273_v63 = vld [vmem:[#allocation2 + $0x58] sm:$0xff]  ;;  %v272_v1 = vld [vmem:[#allocation2 + $0x48] sm:$0xff] }
  0x19   :  { %455 = vmatprep.subr.mxu1 %v576_v0  ;;  %v112_v41 = vld [vmem:[%s681_s3] sm:$0x1]  ;;  %v113_v45 = vld [vmem:[%s681_s3 + $0x1] sm:$0x1]  ;;  %488 = vmatprep.subr.mxu0 %v576_v0  ;;  %v271_v2 = vld [vmem:[#allocation2 + $0x38] sm:$0xff] }
  0x1a   :  { %456 = vmatpush3.msra.mxu1 %v158_v7  ;;  %489 = vmatpush3.msra.mxu0 %v280_v56  ;;  %v270_v3 = vld [vmem:[#allocation2 + $0x28] sm:$0xff]  ;;  %v269_v4 = vld [vmem:[#allocation2 + $0x18] sm:$0xff] }
  0x1b   :  { %457 = vmatprep.subr.mxu1 %v576_v0  ;;  %490 = vmatprep.subr.mxu0 %v576_v0  ;;  %v268_v5 = vld [vmem:[#allocation2 + $0x8] sm:$0xff] }
  0x1c   :  { %458 = vmatpush3.msra.mxu1 %v157_v8  ;;  %491 = vmatpush3.msra.mxu0 %v279_v57  ;;  %v354_v57 = vld [vmem:[%s681_s3 + $0x4] sm:$0x1] }
  0x1d   :  { %459 = vmatprep.subr.mxu1 %v576_v0  ;;  %492 = vmatprep.subr.mxu0 %v576_v0 }
  0x1e   :  { %460 = vmatpush3.msra.mxu1 %v156_v9  ;;  %493 = vmatpush3.msra.mxu0 %v278_v58 }
  0x1f   :  { %461 = vmatprep.subr.mxu1 %v576_v0  ;;  %494 = vmatprep.subr.mxu0 %v576_v0 }
  0x20   :  { %462 = vmatpush3.msra.mxu1 %v155_v10  ;;  %495 = vmatpush3.msra.mxu0 %v277_v59 }
  0x21   :  { %463 = vmatprep.subr.mxu1 %v576_v0  ;;  %496 = vmatprep.subr.mxu0 %v576_v0 }
  0x22   :  { %464 = vmatpush3.msra.mxu1 %v154_v11  ;;  %497 = vmatpush3.msra.mxu0 %v276_v60  ;;  %v355_v60 = vld [vmem:[%s681_s3 + $0x5] sm:$0x1] }
  0x23   :  { %465 = vmatprep.subr.mxu1 %v576_v0  ;;  %498 = vmatprep.subr.mxu0 %v576_v0 }
  0x24   :  { %466 = vmatpush3.msra.mxu1 %v153_v12  ;;  %499 = vmatpush3.msra.mxu0 %v275_v61 }
  0x25   :  { %467 = vmatprep.subr.mxu1 %v576_v0  ;;  %500 = vmatprep.subr.mxu0 %v576_v0 }
  0x26   :  { %468 = vmatpush3.msra.mxu1 %v152_v13  ;;  %501 = vmatpush3.msra.mxu0 %v274_v62 }
  0x27   :  { %469 = vmatprep.subr.mxu1 %v576_v0  ;;  %502 = vmatprep.subr.mxu0 %v576_v0 }
  0x28   :  { %470 = vmatpush3.msra.mxu1 %v151_v14  ;;  %503 = vmatpush3.msra.mxu0 %v273_v63 }
  0x29   :  { %471 = vmatprep.subr.mxu1 %v576_v0  ;;  %504 = vmatprep.subr.mxu0 %v576_v0 }
  0x2a   :  { %472 = vmatpush3.msra.mxu1 %v150_v15  ;;  %505 = vmatpush3.msra.mxu0 %v272_v1 }
  0x2b   :  { %473 = vmatprep.subr.mxu1 %v576_v0  ;;  %506 = vmatprep.subr.mxu0 %v576_v0 }
  0x2c   :  { %474 = vmatpush3.msra.mxu1 %v149_v16  ;;  %507 = vmatpush3.msra.mxu0 %v271_v2 }
  0x2d   :  { %475 = vmatprep.subr.mxu1 %v576_v0  ;;  %508 = vmatprep.subr.mxu0 %v576_v0 }
  0x2e   :  { %476 = vmatpush3.msra.mxu1 %v148_v17  ;;  %509 = vmatpush3.msra.mxu0 %v270_v3 }
  0x2f   :  { %477 = vmatprep.subr.mxu1 %v576_v0  ;;  %510 = vmatprep.subr.mxu0 %v576_v0 }
  0x30   :  { %478 = vmatpush3.msra.mxu1 %v147_v18  ;;  %511 = vmatpush3.msra.mxu0 %v269_v4 }
  0x31   :  { %512 = vmatprep.subr.mxu0 %v576_v0 }
  0x32   :  { %513 = vmatpush3.msra.mxu0 %v268_v5 }
  0xd2   :  { %v108_v19 = vpop.f32.mrf.mxu0 }
  0xd3   :  { %v114_v20 = vrot.slane %v108_v19, 4  ;;  %v120_v21 = vmul.f32 %v108_v19, %v108_v19 }
  0xd4   :  { %v446_v22 = vpop.f32.mrf.mxu0 }
  0xd5   :  { %v115_v23 = vadd.f32 %v114_v20, %v108_v19  ;;  %v121_v24 = vrot.slane %v120_v21, 4 }
  0xd7   :  { %v116_v25 = vrot.slane %v115_v23, 2  ;;  %v122_v26 = vadd.f32 %v121_v24, %v120_v21 }
  0xd9   :  { %v117_v27 = vadd.f32 %v116_v25, %v115_v23  ;;  %v123_v28 = vrot.slane %v122_v26, 2  ;;  %v233_v25 = vld [vmem:[%s681_s3 + $0x2] sm:$0x1] }
  0xdb   :  { %v118_v29 = vrot.slane %v117_v27, 1  ;;  %v124_v30 = vadd.f32 %v123_v28, %v122_v26  ;;  %v234_v28 = vld [vmem:[%s681_s3 + $0x3] sm:$0x1] }
  0xdd   :  { %v119_v31 = vadd.f32 %v118_v29, %v117_v27  ;;  %v125_v32 = vrot.slane %v124_v30, 1 }
  0xdf   :  { %v126_v33 = vadd.f32 %v125_v32, %v124_v30  ;;  %v127_v34 = vmul.f32 0.125, %v119_v31 }
  0xe1   :  { %v128_v35 = vmul.f32 0.125, %v126_v33  ;;  %v129_v36 = vmul.f32 %v127_v34, %v127_v34 }
  0xe3   :  { %v130_v37 = vsub.f32 %v128_v35, %v129_v36 }
  0xe5   :  { %v131_v38 = vadd.f32 1e-05, %v130_v37 }
  0xe7   :  { %523 = vrsqrt.f32 %v131_v38 }
  0xf4   :  { %v524_v43 = vpop.eup %523 }
  0xf5   :  { %v133_v44 = vmul.f32 %v524_v43, %v112_v41 }
  0xf7   :  { %v139_v46 = vrot.slane %v133_v44, %v637_v42  ;;  %v134_v47 = vmul.f32 %v133_v44, %v127_v34 }
  0xf9   :  { %v135_v48 = vsub.f32 %v113_v45, %v134_v47  ;;  %v140_v49 = vmul.f32 %v139_v46, %v108_v19 }
  0xfb   :  { %v144_v50 = vrot.slane %v135_v48, %v637_v42 }
  0xfd   :  { %v145_v51 = vadd.f32 %v144_v50, %v140_v49 }
  0xff   :  { %v146_v52 = vmax.f32 %v145_v51, 0.0 }
 0x101   :  { %480 = vmatmul.mubr.f32.vlgmr.msra.gmra.mxu1 %v146_v52 }
 0x1c1   :  { %v229_v6 = vpop.f32.mrf.mxu1 }
 0x1c2   :  { %v235_v7 = vrot.slane %v229_v6, 4  ;;  %v241_v8 = vmul.f32 %v229_v6, %v229_v6 }
 0x1c3   :  { %v481_v9 = vpop.f32.mrf.mxu1 }
 0x1c4   :  { %v236_v10 = vadd.f32 %v235_v7, %v229_v6  ;;  %v242_v11 = vrot.slane %v241_v8, 4 }
 0x1c6   :  { %v237_v12 = vrot.slane %v236_v10, 2  ;;  %v243_v13 = vadd.f32 %v242_v11, %v241_v8 }
 0x1c8   :  { %v238_v14 = vadd.f32 %v237_v12, %v236_v10  ;;  %v244_v15 = vrot.slane %v243_v13, 2 }
 0x1ca   :  { %v239_v16 = vrot.slane %v238_v14, 1  ;;  %v245_v17 = vadd.f32 %v244_v15, %v243_v13 }
 0x1cc   :  { %v240_v18 = vadd.f32 %v239_v16, %v238_v14  ;;  %v246_v19 = vrot.slane %v245_v17, 1 }
 0x1ce   :  { %v247_v20 = vadd.f32 %v246_v19, %v245_v17  ;;  %v248_v21 = vmul.f32 0.125, %v240_v18 }
 0x1d0   :  { %v249_v22 = vmul.f32 0.125, %v247_v20  ;;  %v250_v23 = vmul.f32 %v248_v21, %v248_v21 }
 0x1d2   :  { %v251_v0 = vsub.f32 %v249_v22, %v250_v23 }
 0x1d4   :  { %v252_v24 = vadd.f32 1e-05, %v251_v0 }
 0x1d6   :  { %525 = vrsqrt.f32 %v252_v24 }
 0x1e3   :  { %v526_v26 = vpop.eup %525 }
 0x1e4   :  { %v254_v27 = vmul.f32 %v526_v26, %v233_v25 }
 0x1e6   :  { %v255_v29 = vmul.f32 %v254_v27, %v248_v21  ;;  %v260_v30 = vrot.slane %v254_v27, %v637_v42 }
 0x1e8   :  { %v256_v31 = vsub.f32 %v234_v28, %v255_v29  ;;  %v261_v32 = vmul.f32 %v260_v30, %v229_v6 }
 0x1ea   :  { %v265_v33 = vrot.slane %v256_v31, %v637_v42 }
 0x1ec   :  { %v266_v34 = vadd.f32 %v265_v33, %v261_v32 }
 0x1ee   :  { %v267_v35 = vmax.f32 %v266_v34, 0.0 }
 0x1f0   :  { %515 = vmatmul.mubr.f32.vlgmr.msra.gmra.mxu0 %v267_v35 }
 0x2b0   :  { %v350_v36 = vpop.f32.mrf.mxu0 }
 0x2b1   :  { %v356_v37 = vrot.slane %v350_v36, 4  ;;  %v362_v38 = vmul.f32 %v350_v36, %v350_v36 }
 0x2b2   :  { %v516_v39 = vpop.f32.mrf.mxu0 }
 0x2b3   :  { %v357_v40 = vadd.f32 %v356_v37, %v350_v36  ;;  %v363_v41 = vrot.slane %v362_v38, 4 }
 0x2b5   :  { %v358_v43 = vrot.slane %v357_v40, 2  ;;  %v364_v44 = vadd.f32 %v363_v41, %v362_v38 }
 0x2b7   :  { %v359_v45 = vadd.f32 %v358_v43, %v357_v40  ;;  %v365_v46 = vrot.slane %v364_v44, 2 }
 0x2b9   :  { %v360_v47 = vrot.slane %v359_v45, 1  ;;  %v366_v48 = vadd.f32 %v365_v46, %v364_v44 }
 0x2bb   :  { %v361_v49 = vadd.f32 %v360_v47, %v359_v45  ;;  %v367_v50 = vrot.slane %v366_v48, 1 }
 0x2bd   :  { %v368_v51 = vadd.f32 %v367_v50, %v366_v48  ;;  %v369_v52 = vmul.f32 0.125, %v361_v49 }
 0x2bf   :  { %v370_v53 = vmul.f32 0.125, %v368_v51  ;;  %v371_v54 = vmul.f32 %v369_v52, %v369_v52 }
 0x2c1   :  { %v372_v55 = vsub.f32 %v370_v53, %v371_v54 }
 0x2c3   :  { %v373_v56 = vadd.f32 1e-05, %v372_v55 }
 0x2c5   :  { %527 = vrsqrt.f32 %v373_v56 }
 0x2d2   :  { %v528_v58 = vpop.eup %527 }
 0x2d3   :  { %v375_v59 = vmul.f32 %v528_v58, %v354_v57 }
 0x2d5   :  { %v376_v61 = vmul.f32 %v375_v59, %v369_v52  ;;  %v381_v62 = vrot.slane %v375_v59, %v637_v42 }
 0x2d7   :  { %v377_v63 = vsub.f32 %v355_v60, %v376_v61  ;;  %v382_v1 = vmul.f32 %v381_v62, %v350_v36 }
 0x2d9   :  { %v386_v2 = vrot.slane %v377_v63, %v637_v42 }
 0x2db   :  { %v387_v3 = vadd.f32 %v386_v2, %v382_v1 }
 0x2dd   :  { %388 = vst [vmem:[#allocation5] sm:$0xff] %v387_v3 }
 0x2de   :  { %560 = shalt.err (!%p557_p9)
}
 0x2df   :  { %398 = dma.vmem_to_hbm [thread:$0]  %s396_s10, 128, %s682_s4, [#allocation4]  }
 0x2e0   :  { %571 = dma.done.wait [#allocation4], 128  }
 0x2e1   :  { %572 = vsyncadd [#allocation4], 4294967168 }
 0x2e2   :  { %402 = vsyncpa [#allocation3], 1 }
 0x2e3   :  { %403 = vsyncpa [#allocation4], 1 }

</bundles_post_ra>
